<compile_context>
chip_gen: v6e
topology: v6e:2x2x1
jax: 0.10.0
libtpu: 0.0.40
codegen_flags: <defaults>
</compile_context>

<pallas_src>
from functools import partial

import jax
import jax.numpy as jnp
from jax.experimental import pallas as pl
from jax.experimental.pallas import tpu as pltpu


# -----------------------------------------------------------------------------
# Activations (match the torch ACT dict)
# -----------------------------------------------------------------------------
_ACTS = {
    "tanh": jnp.tanh,
    "sigmoid": jax.nn.sigmoid,
    "relu": lambda v: jnp.maximum(v, 0.0),
    "relu6": lambda v: jnp.clip(v, 0.0, 6.0),
    "elu": lambda v: jnp.where(v > 0, v, jnp.exp(v) - 1.0),
}


# -----------------------------------------------------------------------------
# Parameter construction (mimics nn.Linear default init; weights stored (in,out))
# -----------------------------------------------------------------------------
def init_linear(key, d_in, d_out):
    kw, kb = jax.random.split(key)
    bound = 1.0 / jnp.sqrt(jnp.float32(d_in))
    w = jax.random.uniform(kw, (d_in, d_out), jnp.float32, -bound, bound)
    b = jax.random.uniform(kb, (d_out,), jnp.float32, -bound, bound)
    return {"w": w, "b": b}


def init_mlp(key, dims):
    keys = jax.random.split(key, max(len(dims) - 1, 1))
    return [init_linear(keys[i], dims[i], dims[i + 1]) for i in range(len(dims) - 1)]


def init_cvae_params(key, z_dim, h_dim, ae_structure_z, ae_structure_h):
    ks = jax.random.split(key, 13)
    params = {
        "encoder_qz": init_mlp(ks[0], ae_structure_z),
        "enc_qz_mu": init_linear(ks[1], ae_structure_z[-1], z_dim),
        "enc_qz_logvar": init_linear(ks[2], ae_structure_z[-1], z_dim),
        "encoder_qhx": init_mlp(ks[3], ae_structure_h),
        "enc_qhx_mu": init_linear(ks[4], ae_structure_h[-1], h_dim),
        "enc_qhx_logvar": init_linear(ks[5], ae_structure_h[-1], h_dim),
        "encoder_qhy": init_mlp(ks[6], ae_structure_z),
        "enc_qhy_mu": init_linear(ks[7], ae_structure_z[-1], h_dim),
        "enc_qhy_logvar": init_linear(ks[8], ae_structure_z[-1], h_dim),
        "encoder_phx": init_mlp(ks[9], ae_structure_h),
        "enc_ph_mu": init_linear(ks[10], ae_structure_h[-1], h_dim),
        "enc_ph_logvar": init_linear(ks[11], ae_structure_h[-1], h_dim),
    }
    dec_dims = [z_dim + h_dim] + ae_structure_z[::-1]
    params["decoder"] = init_mlp(ks[12], dec_dims)
    return params


# -----------------------------------------------------------------------------
# Helpers
# -----------------------------------------------------------------------------
def _block_diag(a, b):
    r1, c1 = a.shape
    r2, c2 = b.shape
    out = jnp.zeros((r1 + r2, c1 + c2), a.dtype)
    out = out.at[:r1, :c1].set(a)
    out = out.at[r1:, c1:].set(b)
    return out


def _ceil_to(v, m):
    return -(-int(v) // m) * m


def _bias_offsets(widths):
    """128-lane-aligned offset of each bias segment inside the packed buffer."""
    offs, cur = [], 0
    for w in widths:
        offs.append(cur)
        cur += _ceil_to(w, 128)
    return offs, cur


def _tpu_vmem_bytes():
    try:
        return int(pltpu.get_tpu_info().vmem_capacity_bytes)
    except Exception:
        return 64 << 20  # conservative default (v7x per-TensorCore VMEM)


def _pick_batch_tile(b_pad, max_bt):
    # b_pad is a multiple of 16; candidates are multiples of 16 (bf16 sublanes).
    cands = [c for c in (256, 128, 64, 32, 16) if c <= max_bt and b_pad % c == 0]
    # Prefer >= 2 grid steps so the "parallel" batch axis can shard across the
    # two TensorCores of a v7x chip (no effect on single-TC v5e/v6e).
    for c in cands:
        if c <= b_pad // 2:
            return c
    return cands[0] if cands else b_pad


# -----------------------------------------------------------------------------
# One-time fusion of parameters into the layout the fused kernel consumes.
# -----------------------------------------------------------------------------
def prepare_fused_params(params, z_dim, h_dim, mm_dtype=jnp.bfloat16):
    """Fuse/concat weights:
       y-trunk = encoder_qz || encoder_qhy   (share input y)
       x-trunk = encoder_qhx || encoder_phx  (share input x)
       heads   = one packed weight, columns ordered
                 [mu_qz | mu_qhx | lv_qz | lv_qhx | mu_qhy | lv_qhy | mu_ph | lv_ph]
                 so [mu | lv] of (z, h_q) occupy the first 2*(z+h) lanes.
       decoder = first layer kept with its original (z+h) rows; LAST layer
                 padded to a multiple of 128 output columns (bias -1e30).
       biases  = all packed into one 128-lane-aligned buffer (one DMA)."""
    zh = z_dim + h_dim
    d_head = 2 * z_dim + 6 * h_dim

    def fuse_trunk(mlp_a, mlp_b):
        ws, bs = [], []
        for i, (la, lb) in enumerate(zip(mlp_a, mlp_b)):
            if i == 0:
                w = jnp.concatenate([la["w"], lb["w"]], axis=1)
            else:
                w = _block_diag(la["w"], lb["w"])
            ws.append(w.astype(mm_dtype))
            bs.append(jnp.concatenate([la["b"], lb["b"]]).astype(jnp.float32))
        return ws, bs

    yw, yb = fuse_trunk(params["encoder_qz"], params["encoder_qhy"])
    xw, xb = fuse_trunk(params["encoder_qhx"], params["encoder_phx"])

    Hz = params["enc_qz_mu"]["w"].shape[0]   # ae_structure_z[-1]
    Hh = params["enc_qhx_mu"]["w"].shape[0]  # ae_structure_h[-1]

    c = {
        "mu_qz": 0,
        "mu_qhx": z_dim,
        "lv_qz": zh,
        "lv_qhx": zh + z_dim,
        "mu_qhy": 2 * zh,
        "lv_qhy": 2 * zh + h_dim,
        "mu_ph": 2 * zh + 2 * h_dim,
        "lv_ph": 2 * zh + 3 * h_dim,
    }

    wy = jnp.zeros((2 * Hz, d_head), jnp.float32)
    wy = wy.at[0:Hz, c["mu_qz"]:c["mu_qz"] + z_dim].set(params["enc_qz_mu"]["w"])
    wy = wy.at[0:Hz, c["lv_qz"]:c["lv_qz"] + z_dim].set(params["enc_qz_logvar"]["w"])
    wy = wy.at[Hz:, c["mu_qhy"]:c["mu_qhy"] + h_dim].set(params["enc_qhy_mu"]["w"])
    wy = wy.at[Hz:, c["lv_qhy"]:c["lv_qhy"] + h_dim].set(params["enc_qhy_logvar"]["w"])

    wx = jnp.zeros((2 * Hh, d_head), jnp.float32)
    wx = wx.at[0:Hh, c["mu_qhx"]:c["mu_qhx"] + h_dim].set(params["enc_qhx_mu"]["w"])
    wx = wx.at[0:Hh, c["lv_qhx"]:c["lv_qhx"] + h_dim].set(params["enc_qhx_logvar"]["w"])
    wx = wx.at[Hh:, c["mu_ph"]:c["mu_ph"] + h_dim].set(params["enc_ph_mu"]["w"])
    wx = wx.at[Hh:, c["lv_ph"]:c["lv_ph"] + h_dim].set(params["enc_ph_logvar"]["w"])

    hb = jnp.zeros((d_head,), jnp.float32)
    hb = hb.at[c["mu_qz"]:c["mu_qz"] + z_dim].set(params["enc_qz_mu"]["b"])
    hb = hb.at[c["lv_qz"]:c["lv_qz"] + z_dim].set(params["enc_qz_logvar"]["b"])
    hb = hb.at[c["mu_qhx"]:c["mu_qhx"] + h_dim].set(params["enc_qhx_mu"]["b"])
    hb = hb.at[c["lv_qhx"]:c["lv_qhx"] + h_dim].set(params["enc_qhx_logvar"]["b"])
    hb = hb.at[c["mu_qhy"]:c["mu_qhy"] + h_dim].set(params["enc_qhy_mu"]["b"])
    hb = hb.at[c["lv_qhy"]:c["lv_qhy"] + h_dim].set(params["enc_qhy_logvar"]["b"])
    hb = hb.at[c["mu_ph"]:c["mu_ph"] + h_dim].set(params["enc_ph_mu"]["b"])
    hb = hb.at[c["lv_ph"]:c["lv_ph"] + h_dim].set(params["enc_ph_logvar"]["b"])

    # Zero-depth trunk corner case: raw input feeds both head halves -> fold.
    if len(params["encoder_qz"]) == 0:
        wy = wy[:Hz] + wy[Hz:]
    if len(params["encoder_qhx"]) == 0:
        wx = wx[:Hh] + wx[Hh:]
    heads_w = jnp.concatenate([wy, wx], axis=0).astype(mm_dtype)

    dec = params["decoder"]
    dec0_w = dec[0]["w"].astype(mm_dtype)
    dec0_b = dec[0]["b"].astype(jnp.float32)
    dec_rest_w = [l["w"].astype(mm_dtype) for l in dec[1:]]
    dec_rest_b = [l["b"].astype(jnp.float32) for l in dec[1:]]

    # Pad the LAST decoder layer to a lane-dense (multiple-of-128) output; the
    # padded logits get bias -1e30 so they vanish under softmax / sigmoid.
    def pad_last(w, b):
        d = w.shape[1]
        dp = _ceil_to(d, 128)
        if dp != d:
            w = jnp.pad(w, ((0, 0), (0, dp - d)))
            b = jnp.pad(b, (0, dp - d), constant_values=-1e30)
        return w, b

    if dec_rest_w:
        dec_rest_w[-1], dec_rest_b[-1] = pad_last(dec_rest_w[-1], dec_rest_b[-1])
    else:
        dec0_w, dec0_b = pad_last(dec0_w, dec0_b)

    # Pack every bias into ONE lane-aligned buffer (single DMA descriptor).
    biases = yb + xb + [hb, dec0_b] + dec_rest_b
    widths = [int(b.shape[0]) for b in biases]
    offs, total = _bias_offsets(widths)
    b_all = jnp.zeros((1, total), jnp.float32)
    for off, b in zip(offs, biases):
        b_all = b_all.at[0, off:off + b.shape[0]].set(b)

    return {
        "y_trunk_w": yw,
        "x_trunk_w": xw,
        "heads_w": heads_w,
        "dec0_w": dec0_w,
        "dec_rest_w": dec_rest_w,
        "b_all": b_all,
    }


# -----------------------------------------------------------------------------
# Fused forward: one pallas_call for the whole network.
# -----------------------------------------------------------------------------
@partial(jax.jit, static_argnames=("z_dim", "h_dim", "act_fn", "likelihood",
                                   "single_buffer_weights"))
def cvae_forward(fused, y, x, eps, *, z_dim, h_dim, act_fn="tanh",
                 likelihood="mult", single_buffer_weights=True):
    yw, xw = fused["y_trunk_w"], fused["x_trunk_w"]
    hw, d0w, drw = fused["heads_w"], fused["dec0_w"], fused["dec_rest_w"]
    b_all = fused["b_all"]
    n_y, n_x, n_dr = len(yw), len(xw), len(drw)
    act = _ACTS[act_fn]

    B, y_dim = y.shape
    zh = z_dim + h_dim
    d_head = hw.shape[1]

    rows_y = yw[-1].shape[1] if n_y else y.shape[1]
    rows_x = xw[-1].shape[1] if n_x else x.shape[1]
    assert hw.shape[0] == rows_y + rows_x
    out_dim_p = drw[-1].shape[1] if n_dr else d0w.shape[1]

    # Packed-bias layout (order == in-kernel consumption order).
    widths = ([w.shape[1] for w in yw] + [w.shape[1] for w in xw]
              + [d_head, d0w.shape[1]] + [w.shape[1] for w in drw])
    offsets, total_b = _bias_offsets(widths)
    assert b_all.shape == (1, total_b)
    bias_layout = list(zip(offsets, widths))

    # Pad batch to a multiple of 16 (bf16 sublane packing) before tiling.
    b_pad = _ceil_to(B, 16)
    if b_pad != B:
        pad = ((0, b_pad - B), (0, 0))
        y, x, eps = jnp.pad(y, pad), jnp.pad(x, pad), jnp.pad(eps, pad)

    vmem_cap = _tpu_vmem_bytes()
    max_bt = 128 if vmem_cap < (96 << 20) else 256  # cap the batch tile on v7x
    BT = _pick_batch_tile(b_pad, max_bt)
    grid = (b_pad // BT,)

    flat_inputs = [y, x, eps] + yw + xw + [hw, d0w] + drw + [b_all]

    def data_spec(d):
        return pl.BlockSpec((BT, d), lambda i: (i, 0))

    def weight_spec(a):
        if single_buffer_weights:
            # Grid-invariant operand: single buffer halves its VMEM footprint.
            return pl.BlockSpec(a.shape, lambda i: (0, 0),
                                pipeline_mode=pl.Buffered(1))
        return pl.BlockSpec(a.shape, lambda i: (0, 0))

    in_specs = [data_spec(y.shape[1]), data_spec(x.shape[1]), data_spec(zh)]
    in_specs += [weight_spec(a) for a in flat_inputs[3:]]

    out_shape = (jax.ShapeDtypeStruct((b_pad, out_dim_p), jnp.float32),
                 jax.ShapeDtypeStruct((b_pad, d_head), jnp.float32))
    out_specs = (data_spec(out_dim_p), data_spec(d_head))

    def kernel(*refs):
        it = iter(refs)
        y_r, x_r, eps_r = next(it), next(it), next(it)
        yw_r = [next(it) for _ in range(n_y)]
        xw_r = [next(it) for _ in range(n_x)]
        hw_r, d0w_r = next(it), next(it)
        drw_r = [next(it) for _ in range(n_dr)]
        ball_r = next(it)
        out_r, heads_r = next(it), next(it)

        bias_it = iter(bias_layout)

        def next_bias():
            off, w = next(bias_it)
            return ball_r[:, off:off + w]      # (1, w) f32, broadcasts over BT

        def mm(a, w):
            # bf16 operands on the MXU, f32 accumulation (cast once / consumer).
            return jnp.dot(a.astype(w.dtype), w,
                           preferred_element_type=jnp.float32)

        # Fused encoder trunks: (qz || qhy) over y, (qhx || phx) over x.
        ty = y_r[...]
        for w_ref in yw_r:
            ty = act(mm(ty, w_ref[...]) + next_bias())
        tx = x_r[...]
        for w_ref in xw_r:
            tx = act(mm(tx, w_ref[...]) + next_bias())

        # All 8 mu/logvar heads: two accumulating matmuls on row-slices of the
        # packed heads weight -- no in-kernel lane concat of the two trunks.
        heads = (mm(ty, hw_r[0:rows_y, :])
                 + mm(tx, hw_r[rows_y:rows_y + rows_x, :])
                 + next_bias())
        heads_r[...] = heads

        # Head columns are [mu_qz|mu_qhx | lv_qz|lv_qhx | ...] so the z / h_q
        # reparameterization is ONE (BT, z+h) elementwise op and its result
        # feeds the ORIGINAL (z+h)-row first decoder weight directly.
        mu = heads[:, 0:zh]
        lv = heads[:, zh:2 * zh]
        latent = mu + eps_r[...] * jnp.exp(0.5 * lv)

        o = mm(latent, d0w_r[...]) + next_bias()
        if n_dr > 0:
            o = act(o)
            for j, w_ref in enumerate(drw_r):
                o = mm(o, w_ref[...]) + next_bias()
                if j != n_dr - 1:
                    o = act(o)

        if likelihood == "mult":
            # Padded logit columns carry bias -1e30 -> exp underflows to 0 and
            # cannot pollute the softmax denominator.
            m = jnp.max(o, axis=-1, keepdims=True)
            e = jnp.exp(o - m)
            s = jnp.sum(e, axis=-1, keepdims=True)
            out_r[...] = e / s     # exact divide: output feeds the loss
        else:
            out_r[...] = jax.nn.sigmoid(o)

    recon_p, heads_out = pl.pallas_call(
        kernel,
        out_shape=out_shape,
        grid=grid,
        in_specs=in_specs,
        out_specs=out_specs,
        compiler_params=pltpu.CompilerParams(
            dimension_semantics=("parallel",),
            vmem_limit_bytes=int(0.75 * vmem_cap)),
    )(*flat_inputs)

    # Cheap XLA slices: drop batch/lane padding, split the lane-dense heads.
    # (Decoder output dim == y_dim by CVAE construction.)
    recon = recon_p[:B, :y_dim]
    o1 = zh
    mu_qz = heads_out[:B, 0:z_dim]
    mu_qhx = heads_out[:B, z_dim:o1]
    lv_qz = heads_out[:B, o1:o1 + z_dim]
    lv_qhx = heads_out[:B, o1 + z_dim:2 * o1]
    mu_qhy = heads_out[:B, 2 * o1:2 * o1 + h_dim]
    lv_qhy = heads_out[:B, 2 * o1 + h_dim:2 * o1 + 2 * h_dim]
    mu_ph = heads_out[:B, 2 * o1 + 2 * h_dim:2 * o1 + 3 * h_dim]
    lv_ph = heads_out[:B, 2 * o1 + 3 * h_dim:2 * o1 + 4 * h_dim]
    return (recon, mu_qz, lv_qz, mu_qhx, lv_qhx, mu_qhy, lv_qhy, mu_ph, lv_ph)


# -----------------------------------------------------------------------------
# Pure-JAX reference (same bf16 matmul precision) for correctness checking.
# -----------------------------------------------------------------------------
def reference_forward(params, y, x, eps_z, eps_h, act_fn="tanh",
                      likelihood="mult", mm_dtype=jnp.bfloat16):
    act = _ACTS[act_fn]

    def lin(v, lyr):
        return jnp.dot(v.astype(mm_dtype), lyr["w"].astype(mm_dtype),
                       preferred_element_type=jnp.float32) + lyr["b"]

    def run_mlp(layers, v):
        for lyr in layers:
            v = act(lin(v, lyr))
        return v

    t_qz = run_mlp(params["encoder_qz"], y)
    t_qhx = run_mlp(params["encoder_qhx"], x)
    t_qhy = run_mlp(params["encoder_qhy"], y)
    t_phx = run_mlp(params["encoder_phx"], x)
    mu_qz, lv_qz = lin(t_qz, params["enc_qz_mu"]), lin(t_qz, params["enc_qz_logvar"])
    mu_qhx, lv_qhx = lin(t_qhx, params["enc_qhx_mu"]), lin(t_qhx, params["enc_qhx_logvar"])
    mu_qhy, lv_qhy = lin(t_qhy, params["enc_qhy_mu"]), lin(t_qhy, params["enc_qhy_logvar"])
    mu_ph, lv_ph = lin(t_phx, params["enc_ph_mu"]), lin(t_phx, params["enc_ph_logvar"])

    z = mu_qz + eps_z * jnp.exp(0.5 * lv_qz)
    hq = mu_qhx + eps_h * jnp.exp(0.5 * lv_qhx)
    o = jnp.concatenate([z, hq], axis=1)
    dec = params["decoder"]
    for i, lyr in enumerate(dec):
        o = lin(o, lyr)
        if i != len(dec) - 1:
            o = act(o)
    out = jax.nn.softmax(o, axis=1) if likelihood == "mult" else jax.nn.sigmoid(o)
    return (out, mu_qz, lv_qz, mu_qhx, lv_qhx, mu_qhy, lv_qhy, mu_ph, lv_ph)


# -----------------------------------------------------------------------------
if __name__ == "__main__":
    batch = 8
    y_dim, x_dim = 64, 48
    z_dim, h_dim = 16, 16          # 2*z + 6*h = 128 -> lane-dense fused heads
    ae_structure_z = [y_dim, 32]
    ae_structure_h = [x_dim, 32]
    act_fn = "tanh"
    likelihood = "mult"

    key = jax.random.PRNGKey(0)
    k_params, k_y, k_x, k_eps = jax.random.split(key, 4)

    params = init_cvae_params(k_params, z_dim, h_dim, ae_structure_z, ae_structure_h)
    fused = prepare_fused_params(params, z_dim, h_dim)

    y = jax.random.uniform(k_y, (batch, y_dim), jnp.float32)
    x = jax.random.uniform(k_x, (batch, x_dim), jnp.float32)
    # TODO(synk): torch draws eps inside forward (randn_like); here the noise
    # is an explicit (B, z+h) input so the kernel stays deterministic/testable.
    eps = jax.random.normal(k_eps, (batch, z_dim + h_dim), jnp.float32)

    run = partial(cvae_forward, fused, y, x, eps, z_dim=z_dim, h_dim=h_dim,
                  act_fn=act_fn, likelihood=likelihood)
    try:
        outs = jax.block_until_ready(run(single_buffer_weights=True))
    except Exception:
        # pl.Buffered(1) single-buffering of grid-invariant weights is not
        # supported by this JAX build -> default double buffering instead.
        outs = jax.block_until_ready(run(single_buffer_weights=False))

    # shape checks
    recon = outs[0]
    assert recon.shape == (batch, y_dim)
    assert all(o.shape == (batch, z_dim) for o in outs[1:3])
    assert all(o.shape == (batch, h_dim) for o in outs[3:])
    # softmax rows sum to 1 (exact divide in-kernel)
    assert bool(jnp.all(jnp.abs(jnp.sum(recon, axis=1) - 1.0) < 1e-3))

    # numerical check vs pure-JAX reference using the same bf16 matmul precision
    refs = reference_forward(params, y, x, eps[:, :z_dim], eps[:, z_dim:],
                             act_fn=act_fn, likelihood=likelihood)
    for got, ref in zip(outs, refs):
        err = float(jnp.max(jnp.abs(got - ref)))
        assert err < 5e-3, f"max abs err {err}"

    print("KERNEL_OK")
</pallas_src>

<mosaic_0001>
module attributes {stable_mosaic.version = 11 : i64} {
  func.func @kernel(%arg0: i32, %arg1: memref<16x64xf32, #tpu.memory_space<vmem>>, %arg2: memref<16x48xf32, #tpu.memory_space<vmem>>, %arg3: memref<16x32xf32, #tpu.memory_space<vmem>>, %arg4: memref<64x64xbf16, #tpu.memory_space<vmem>>, %arg5: memref<48x64xbf16, #tpu.memory_space<vmem>>, %arg6: memref<128x128xbf16, #tpu.memory_space<vmem>>, %arg7: memref<32x32xbf16, #tpu.memory_space<vmem>>, %arg8: memref<32x128xbf16, #tpu.memory_space<vmem>>, %arg9: memref<1x640xf32, #tpu.memory_space<vmem>>, %arg10: memref<16x128xf32, #tpu.memory_space<vmem>>, %arg11: memref<16x128xf32, #tpu.memory_space<vmem>>) attributes {dimension_semantics = [#tpu.dimension_semantics<parallel>], iteration_bounds = array<i64: 1>, scalar_prefetch = 0 : i64, scratch_operands = 0 : i64, tpu.core_type = #tpu.core_type<tc>, window_params = [{transform_indices = @transform_0, window_bounds = array<i64: 16, 64>}, {transform_indices = @transform_1, window_bounds = array<i64: 16, 48>}, {transform_indices = @transform_2, window_bounds = array<i64: 16, 32>}, {pipeline_mode = #tpu.pipeline_mode<synchronous>, transform_indices = @transform_3, window_bounds = array<i64: 64, 64>}, {pipeline_mode = #tpu.pipeline_mode<synchronous>, transform_indices = @transform_4, window_bounds = array<i64: 48, 64>}, {pipeline_mode = #tpu.pipeline_mode<synchronous>, transform_indices = @transform_5, window_bounds = array<i64: 128, 128>}, {pipeline_mode = #tpu.pipeline_mode<synchronous>, transform_indices = @transform_6, window_bounds = array<i64: 32, 32>}, {pipeline_mode = #tpu.pipeline_mode<synchronous>, transform_indices = @transform_7, window_bounds = array<i64: 32, 128>}, {pipeline_mode = #tpu.pipeline_mode<synchronous>, transform_indices = @transform_8, window_bounds = array<i64: 1, 640>}, {transform_indices = @transform_9, window_bounds = array<i64: 16, 128>}, {transform_indices = @transform_10, window_bounds = array<i64: 16, 128>}]} {
    %c0 = arith.constant 0 : index
    %c0_0 = arith.constant 0 : index
    %0 = vector.load %arg1[%c0, %c0_0] : memref<16x64xf32, #tpu.memory_space<vmem>>, vector<16x64xf32>
    %c0_1 = arith.constant 0 : index
    %c0_2 = arith.constant 0 : index
    %1 = vector.load %arg4[%c0_1, %c0_2] : memref<64x64xbf16, #tpu.memory_space<vmem>>, vector<64x64xbf16>
    %2 = arith.truncf %0 : vector<16x64xf32> to vector<16x64xbf16>
    %cst = arith.constant dense<0.000000e+00> : vector<16x64xf32>
    %3 = tpu.matmul %2, %1, %cst {dimension_numbers = #tpu.dot_dimension_numbers<[1], [0], [0], [1], [0, 0, 1, 1], [], []>} : vector<16x64xbf16>, vector<64x64xbf16>, vector<16x64xf32> -> vector<16x64xf32>
    %c0_3 = arith.constant 0 : index
    %c0_4 = arith.constant 0 : index
    %4 = vector.load %arg9[%c0_3, %c0_4] : memref<1x640xf32, #tpu.memory_space<vmem>>, vector<1x64xf32>
    %5 = vector.broadcast %4 : vector<1x64xf32> to vector<16x64xf32>
    %6 = arith.addf %3, %5 : vector<16x64xf32>
    %7 = math.tanh %6 : vector<16x64xf32>
    %c0_5 = arith.constant 0 : index
    %c0_6 = arith.constant 0 : index
    %8 = vector.load %arg2[%c0_5, %c0_6] : memref<16x48xf32, #tpu.memory_space<vmem>>, vector<16x48xf32>
    %c0_7 = arith.constant 0 : index
    %c0_8 = arith.constant 0 : index
    %9 = vector.load %arg5[%c0_7, %c0_8] : memref<48x64xbf16, #tpu.memory_space<vmem>>, vector<48x64xbf16>
    %10 = arith.truncf %8 : vector<16x48xf32> to vector<16x48xbf16>
    %cst_9 = arith.constant dense<0.000000e+00> : vector<16x64xf32>
    %11 = tpu.matmul %10, %9, %cst_9 {dimension_numbers = #tpu.dot_dimension_numbers<[1], [0], [0], [1], [0, 0, 1, 1], [], []>} : vector<16x48xbf16>, vector<48x64xbf16>, vector<16x64xf32> -> vector<16x64xf32>
    %c0_10 = arith.constant 0 : index
    %c128 = arith.constant 128 : index
    %12 = vector.load %arg9[%c0_10, %c128] : memref<1x640xf32, #tpu.memory_space<vmem>>, vector<1x64xf32>
    %13 = vector.broadcast %12 : vector<1x64xf32> to vector<16x64xf32>
    %14 = arith.addf %11, %13 : vector<16x64xf32>
    %15 = math.tanh %14 : vector<16x64xf32>
    %c0_11 = arith.constant 0 : index
    %c0_12 = arith.constant 0 : index
    %16 = vector.load %arg6[%c0_11, %c0_12] : memref<128x128xbf16, #tpu.memory_space<vmem>>, vector<64x128xbf16>
    %17 = arith.truncf %7 : vector<16x64xf32> to vector<16x64xbf16>
    %cst_13 = arith.constant dense<0.000000e+00> : vector<16x128xf32>
    %18 = tpu.matmul %17, %16, %cst_13 {dimension_numbers = #tpu.dot_dimension_numbers<[1], [0], [0], [1], [0, 0, 1, 1], [], []>} : vector<16x64xbf16>, vector<64x128xbf16>, vector<16x128xf32> -> vector<16x128xf32>
    %c64 = arith.constant 64 : index
    %c0_14 = arith.constant 0 : index
    %19 = vector.load %arg6[%c64, %c0_14] : memref<128x128xbf16, #tpu.memory_space<vmem>>, vector<64x128xbf16>
    %20 = arith.truncf %15 : vector<16x64xf32> to vector<16x64xbf16>
    %cst_15 = arith.constant dense<0.000000e+00> : vector<16x128xf32>
    %21 = tpu.matmul %20, %19, %cst_15 {dimension_numbers = #tpu.dot_dimension_numbers<[1], [0], [0], [1], [0, 0, 1, 1], [], []>} : vector<16x64xbf16>, vector<64x128xbf16>, vector<16x128xf32> -> vector<16x128xf32>
    %22 = arith.addf %18, %21 : vector<16x128xf32>
    %c0_16 = arith.constant 0 : index
    %c256 = arith.constant 256 : index
    %23 = vector.load %arg9[%c0_16, %c256] : memref<1x640xf32, #tpu.memory_space<vmem>>, vector<1x128xf32>
    %24 = vector.broadcast %23 : vector<1x128xf32> to vector<16x128xf32>
    %25 = arith.addf %22, %24 : vector<16x128xf32>
    %c0_17 = arith.constant 0 : index
    %c0_18 = arith.constant 0 : index
    %26 = vector.load %arg11[%c0_17, %c0_18] : memref<16x128xf32, #tpu.memory_space<vmem>>, vector<16x128xf32>
    tpu.vector_store %arg11[%c0_17, %c0_18], %25 {strides = array<i32>} : memref<16x128xf32, #tpu.memory_space<vmem>>, vector<16x128xf32>,
    %27 = vector.extract_strided_slice %25 {offsets = [0, 0], sizes = [16, 32], strides = [1, 1]} : vector<16x128xf32> to vector<16x32xf32>
    %28 = vector.extract_strided_slice %25 {offsets = [0, 32], sizes = [16, 32], strides = [1, 1]} : vector<16x128xf32> to vector<16x32xf32>
    %c0_19 = arith.constant 0 : index
    %c0_20 = arith.constant 0 : index
    %29 = vector.load %arg3[%c0_19, %c0_20] : memref<16x32xf32, #tpu.memory_space<vmem>>, vector<16x32xf32>
    %cst_21 = arith.constant 5.000000e-01 : f32
    %30 = vector.broadcast %cst_21 : f32 to vector<16x32xf32>
    %31 = arith.mulf %30, %28 : vector<16x32xf32>
    %32 = math.exp %31 : vector<16x32xf32>
    %33 = arith.mulf %29, %32 : vector<16x32xf32>
    %34 = arith.addf %27, %33 : vector<16x32xf32>
    %c0_22 = arith.constant 0 : index
    %c0_23 = arith.constant 0 : index
    %35 = vector.load %arg7[%c0_22, %c0_23] : memref<32x32xbf16, #tpu.memory_space<vmem>>, vector<32x32xbf16>
    %36 = arith.truncf %34 : vector<16x32xf32> to vector<16x32xbf16>
    %cst_24 = arith.constant dense<0.000000e+00> : vector<16x32xf32>
    %37 = tpu.matmul %36, %35, %cst_24 {dimension_numbers = #tpu.dot_dimension_numbers<[1], [0], [0], [1], [0, 0, 1, 1], [], []>} : vector<16x32xbf16>, vector<32x32xbf16>, vector<16x32xf32> -> vector<16x32xf32>
    %c0_25 = arith.constant 0 : index
    %c384 = arith.constant 384 : index
    %38 = vector.load %arg9[%c0_25, %c384] : memref<1x640xf32, #tpu.memory_space<vmem>>, vector<1x32xf32>
    %39 = vector.broadcast %38 : vector<1x32xf32> to vector<16x32xf32>
    %40 = arith.addf %37, %39 : vector<16x32xf32>
    %41 = math.tanh %40 : vector<16x32xf32>
    %c0_26 = arith.constant 0 : index
    %c0_27 = arith.constant 0 : index
    %42 = vector.load %arg8[%c0_26, %c0_27] : memref<32x128xbf16, #tpu.memory_space<vmem>>, vector<32x128xbf16>
    %43 = arith.truncf %41 : vector<16x32xf32> to vector<16x32xbf16>
    %cst_28 = arith.constant dense<0.000000e+00> : vector<16x128xf32>
    %44 = tpu.matmul %43, %42, %cst_28 {dimension_numbers = #tpu.dot_dimension_numbers<[1], [0], [0], [1], [0, 0, 1, 1], [], []>} : vector<16x32xbf16>, vector<32x128xbf16>, vector<16x128xf32> -> vector<16x128xf32>
    %c0_29 = arith.constant 0 : index
    %c512 = arith.constant 512 : index
    %45 = vector.load %arg9[%c0_29, %c512] : memref<1x640xf32, #tpu.memory_space<vmem>>, vector<1x128xf32>
    %46 = vector.broadcast %45 : vector<1x128xf32> to vector<16x128xf32>
    %47 = arith.addf %44, %46 : vector<16x128xf32>
    %cst_30 = arith.constant dense<0xFF800000> : vector<16xf32>
    %48 = vector.multi_reduction <maximumf>, %47, %cst_30 [1] : vector<16x128xf32> to vector<16xf32>
    %49 = vector.shape_cast %48 : vector<16xf32> to vector<16x1xf32>
    %50 = vector.broadcast %49 : vector<16x1xf32> to vector<16x128xf32>
    %51 = arith.subf %47, %50 : vector<16x128xf32>
    %52 = math.exp %51 : vector<16x128xf32>
    %cst_31 = arith.constant dense<0.000000e+00> : vector<16xf32>
    %53 = vector.multi_reduction <add>, %52, %cst_31 [1] : vector<16x128xf32> to vector<16xf32>
    %54 = vector.shape_cast %53 : vector<16xf32> to vector<16x1xf32>
    %55 = vector.broadcast %54 : vector<16x1xf32> to vector<16x128xf32>
    %56 = arith.divf %52, %55 : vector<16x128xf32>
    %c0_32 = arith.constant 0 : index
    %c0_33 = arith.constant 0 : index
    %57 = vector.load %arg10[%c0_32, %c0_33] : memref<16x128xf32, #tpu.memory_space<vmem>>, vector<16x128xf32>
    tpu.vector_store %arg10[%c0_32, %c0_33], %56 {strides = array<i32>} : memref<16x128xf32, #tpu.memory_space<vmem>>, vector<16x128xf32>,
    return
  }
  func.func @transform_0(%arg0: i32) -> (i32, i32) {
    %c0_i32 = arith.constant 0 : i32
    %c0_i32_0 = arith.constant 0 : i32
    return %arg0, %c0_i32 : i32, i32
  }
  func.func @transform_1(%arg0: i32) -> (i32, i32) {
    %c0_i32 = arith.constant 0 : i32
    %c0_i32_0 = arith.constant 0 : i32
    return %arg0, %c0_i32 : i32, i32
  }
  func.func @transform_2(%arg0: i32) -> (i32, i32) {
    %c0_i32 = arith.constant 0 : i32
    %c0_i32_0 = arith.constant 0 : i32
    return %arg0, %c0_i32 : i32, i32
  }
  func.func @transform_3(%arg0: i32) -> (i32, i32) {
    %c0_i32 = arith.constant 0 : i32
    %c0_i32_0 = arith.constant 0 : i32
    %c0_i32_1 = arith.constant 0 : i32
    return %c0_i32, %c0_i32_0 : i32, i32
  }
  func.func @transform_4(%arg0: i32) -> (i32, i32) {
    %c0_i32 = arith.constant 0 : i32
    %c0_i32_0 = arith.constant 0 : i32
    %c0_i32_1 = arith.constant 0 : i32
    return %c0_i32, %c0_i32_0 : i32, i32
  }
  func.func @transform_5(%arg0: i32) -> (i32, i32) {
    %c0_i32 = arith.constant 0 : i32
    %c0_i32_0 = arith.constant 0 : i32
    %c0_i32_1 = arith.constant 0 : i32
    return %c0_i32, %c0_i32_0 : i32, i32
  }
  func.func @transform_6(%arg0: i32) -> (i32, i32) {
    %c0_i32 = arith.constant 0 : i32
    %c0_i32_0 = arith.constant 0 : i32
    %c0_i32_1 = arith.constant 0 : i32
    return %c0_i32, %c0_i32_0 : i32, i32
  }
  func.func @transform_7(%arg0: i32) -> (i32, i32) {
    %c0_i32 = arith.constant 0 : i32
    %c0_i32_0 = arith.constant 0 : i32
    %c0_i32_1 = arith.constant 0 : i32
    return %c0_i32, %c0_i32_0 : i32, i32
  }
  func.func @transform_8(%arg0: i32) -> (i32, i32) {
    %c0_i32 = arith.constant 0 : i32
    %c0_i32_0 = arith.constant 0 : i32
    %c0_i32_1 = arith.constant 0 : i32
    return %c0_i32, %c0_i32_0 : i32, i32
  }
  func.func @transform_9(%arg0: i32) -> (i32, i32) {
    %c0_i32 = arith.constant 0 : i32
    %c0_i32_0 = arith.constant 0 : i32
    return %arg0, %c0_i32 : i32, i32
  }
  func.func @transform_10(%arg0: i32) -> (i32, i32) {
    %c0_i32 = arith.constant 0 : i32
    %c0_i32_0 = arith.constant 0 : i32
    return %arg0, %c0_i32 : i32, i32
  }
}

module attributes {stable_mosaic.version = 11 : i64} {
  func.func @kernel(%arg0: i32, %arg1: memref<16x64xf32, #tpu.memory_space<vmem>>, %arg2: memref<16x48xf32, #tpu.memory_space<vmem>>, %arg3: memref<16x32xf32, #tpu.memory_space<vmem>>, %arg4: memref<64x64xbf16, #tpu.memory_space<vmem>>, %arg5: memref<48x64xbf16, #tpu.memory_space<vmem>>, %arg6: memref<128x128xbf16, #tpu.memory_space<vmem>>, %arg7: memref<32x32xbf16, #tpu.memory_space<vmem>>, %arg8: memref<32x128xbf16, #tpu.memory_space<vmem>>, %arg9: memref<1x640xf32, #tpu.memory_space<vmem>>, %arg10: memref<16x128xf32, #tpu.memory_space<vmem>>, %arg11: memref<16x128xf32, #tpu.memory_space<vmem>>) attributes {dimension_semantics = [#tpu.dimension_semantics<parallel>], iteration_bounds = array<i64: 1>, scalar_prefetch = 0 : i64, scratch_operands = 0 : i64, tpu.core_type = #tpu.core_type<tc>, window_params = [{transform_indices = @transform_0, window_bounds = array<i64: 16, 64>}, {transform_indices = @transform_1, window_bounds = array<i64: 16, 48>}, {transform_indices = @transform_2, window_bounds = array<i64: 16, 32>}, {pipeline_mode = #tpu.pipeline_mode<synchronous>, transform_indices = @transform_3, window_bounds = array<i64: 64, 64>}, {pipeline_mode = #tpu.pipeline_mode<synchronous>, transform_indices = @transform_4, window_bounds = array<i64: 48, 64>}, {pipeline_mode = #tpu.pipeline_mode<synchronous>, transform_indices = @transform_5, window_bounds = array<i64: 128, 128>}, {pipeline_mode = #tpu.pipeline_mode<synchronous>, transform_indices = @transform_6, window_bounds = array<i64: 32, 32>}, {pipeline_mode = #tpu.pipeline_mode<synchronous>, transform_indices = @transform_7, window_bounds = array<i64: 32, 128>}, {pipeline_mode = #tpu.pipeline_mode<synchronous>, transform_indices = @transform_8, window_bounds = array<i64: 1, 640>}, {transform_indices = @transform_9, window_bounds = array<i64: 16, 128>}, {transform_indices = @transform_10, window_bounds = array<i64: 16, 128>}]} {
    %c0 = arith.constant 0 : index
    %c0_0 = arith.constant 0 : index
    %0 = vector.load %arg1[%c0, %c0_0] : memref<16x64xf32, #tpu.memory_space<vmem>>, vector<16x64xf32>
    %c0_1 = arith.constant 0 : index
    %c0_2 = arith.constant 0 : index
    %1 = vector.load %arg4[%c0_1, %c0_2] : memref<64x64xbf16, #tpu.memory_space<vmem>>, vector<64x64xbf16>
    %2 = arith.truncf %0 : vector<16x64xf32> to vector<16x64xbf16>
    %cst = arith.constant dense<0.000000e+00> : vector<16x64xf32>
    %3 = tpu.matmul %2, %1, %cst {dimension_numbers = #tpu.dot_dimension_numbers<[1], [0], [0], [1], [0, 0, 1, 1], [], []>} : vector<16x64xbf16>, vector<64x64xbf16>, vector<16x64xf32> -> vector<16x64xf32>
    %c0_3 = arith.constant 0 : index
    %c0_4 = arith.constant 0 : index
    %4 = vector.load %arg9[%c0_3, %c0_4] : memref<1x640xf32, #tpu.memory_space<vmem>>, vector<1x64xf32>
    %5 = vector.broadcast %4 : vector<1x64xf32> to vector<16x64xf32>
    %6 = arith.addf %3, %5 : vector<16x64xf32>
    %7 = math.tanh %6 : vector<16x64xf32>
    %c0_5 = arith.constant 0 : index
    %c0_6 = arith.constant 0 : index
    %8 = vector.load %arg2[%c0_5, %c0_6] : memref<16x48xf32, #tpu.memory_space<vmem>>, vector<16x48xf32>
    %c0_7 = arith.constant 0 : index
    %c0_8 = arith.constant 0 : index
    %9 = vector.load %arg5[%c0_7, %c0_8] : memref<48x64xbf16, #tpu.memory_space<vmem>>, vector<48x64xbf16>
    %10 = arith.truncf %8 : vector<16x48xf32> to vector<16x48xbf16>
    %cst_9 = arith.constant dense<0.000000e+00> : vector<16x64xf32>
    %11 = tpu.matmul %10, %9, %cst_9 {dimension_numbers = #tpu.dot_dimension_numbers<[1], [0], [0], [1], [0, 0, 1, 1], [], []>} : vector<16x48xbf16>, vector<48x64xbf16>, vector<16x64xf32> -> vector<16x64xf32>
    %c0_10 = arith.constant 0 : index
    %c128 = arith.constant 128 : index
    %12 = vector.load %arg9[%c0_10, %c128] : memref<1x640xf32, #tpu.memory_space<vmem>>, vector<1x64xf32>
    %13 = vector.broadcast %12 : vector<1x64xf32> to vector<16x64xf32>
    %14 = arith.addf %11, %13 : vector<16x64xf32>
    %15 = math.tanh %14 : vector<16x64xf32>
    %c0_11 = arith.constant 0 : index
    %c0_12 = arith.constant 0 : index
    %16 = vector.load %arg6[%c0_11, %c0_12] : memref<128x128xbf16, #tpu.memory_space<vmem>>, vector<64x128xbf16>
    %17 = arith.truncf %7 : vector<16x64xf32> to vector<16x64xbf16>
    %cst_13 = arith.constant dense<0.000000e+00> : vector<16x128xf32>
    %18 = tpu.matmul %17, %16, %cst_13 {dimension_numbers = #tpu.dot_dimension_numbers<[1], [0], [0], [1], [0, 0, 1, 1], [], []>} : vector<16x64xbf16>, vector<64x128xbf16>, vector<16x128xf32> -> vector<16x128xf32>
    %c64 = arith.constant 64 : index
    %c0_14 = arith.constant 0 : index
    %19 = vector.load %arg6[%c64, %c0_14] : memref<128x128xbf16, #tpu.memory_space<vmem>>, vector<64x128xbf16>
    %20 = arith.truncf %15 : vector<16x64xf32> to vector<16x64xbf16>
    %cst_15 = arith.constant dense<0.000000e+00> : vector<16x128xf32>
    %21 = tpu.matmul %20, %19, %cst_15 {dimension_numbers = #tpu.dot_dimension_numbers<[1], [0], [0], [1], [0, 0, 1, 1], [], []>} : vector<16x64xbf16>, vector<64x128xbf16>, vector<16x128xf32> -> vector<16x128xf32>
    %22 = arith.addf %18, %21 : vector<16x128xf32>
    %c0_16 = arith.constant 0 : index
    %c256 = arith.constant 256 : index
    %23 = vector.load %arg9[%c0_16, %c256] : memref<1x640xf32, #tpu.memory_space<vmem>>, vector<1x128xf32>
    %24 = vector.broadcast %23 : vector<1x128xf32> to vector<16x128xf32>
    %25 = arith.addf %22, %24 : vector<16x128xf32>
    %c0_17 = arith.constant 0 : index
    %c0_18 = arith.constant 0 : index
    %26 = vector.load %arg11[%c0_17, %c0_18] : memref<16x128xf32, #tpu.memory_space<vmem>>, vector<16x128xf32>
    tpu.vector_store %arg11[%c0_17, %c0_18], %25 {strides = array<i32>} : memref<16x128xf32, #tpu.memory_space<vmem>>, vector<16x128xf32>,
    %27 = vector.extract_strided_slice %25 {offsets = [0, 0], sizes = [16, 32], strides = [1, 1]} : vector<16x128xf32> to vector<16x32xf32>
    %28 = vector.extract_strided_slice %25 {offsets = [0, 32], sizes = [16, 32], strides = [1, 1]} : vector<16x128xf32> to vector<16x32xf32>
    %c0_19 = arith.constant 0 : index
    %c0_20 = arith.constant 0 : index
    %29 = vector.load %arg3[%c0_19, %c0_20] : memref<16x32xf32, #tpu.memory_space<vmem>>, vector<16x32xf32>
    %cst_21 = arith.constant 5.000000e-01 : f32
    %30 = vector.broadcast %cst_21 : f32 to vector<16x32xf32>
    %31 = arith.mulf %30, %28 : vector<16x32xf32>
    %32 = math.exp %31 : vector<16x32xf32>
    %33 = arith.mulf %29, %32 : vector<16x32xf32>
    %34 = arith.addf %27, %33 : vector<16x32xf32>
    %c0_22 = arith.constant 0 : index
    %c0_23 = arith.constant 0 : index
    %35 = vector.load %arg7[%c0_22, %c0_23] : memref<32x32xbf16, #tpu.memory_space<vmem>>, vector<32x32xbf16>
    %36 = arith.truncf %34 : vector<16x32xf32> to vector<16x32xbf16>
    %cst_24 = arith.constant dense<0.000000e+00> : vector<16x32xf32>
    %37 = tpu.matmul %36, %35, %cst_24 {dimension_numbers = #tpu.dot_dimension_numbers<[1], [0], [0], [1], [0, 0, 1, 1], [], []>} : vector<16x32xbf16>, vector<32x32xbf16>, vector<16x32xf32> -> vector<16x32xf32>
    %c0_25 = arith.constant 0 : index
    %c384 = arith.constant 384 : index
    %38 = vector.load %arg9[%c0_25, %c384] : memref<1x640xf32, #tpu.memory_space<vmem>>, vector<1x32xf32>
    %39 = vector.broadcast %38 : vector<1x32xf32> to vector<16x32xf32>
    %40 = arith.addf %37, %39 : vector<16x32xf32>
    %41 = math.tanh %40 : vector<16x32xf32>
    %c0_26 = arith.constant 0 : index
    %c0_27 = arith.constant 0 : index
    %42 = vector.load %arg8[%c0_26, %c0_27] : memref<32x128xbf16, #tpu.memory_space<vmem>>, vector<32x128xbf16>
    %43 = arith.truncf %41 : vector<16x32xf32> to vector<16x32xbf16>
    %cst_28 = arith.constant dense<0.000000e+00> : vector<16x128xf32>
    %44 = tpu.matmul %43, %42, %cst_28 {dimension_numbers = #tpu.dot_dimension_numbers<[1], [0], [0], [1], [0, 0, 1, 1], [], []>} : vector<16x32xbf16>, vector<32x128xbf16>, vector<16x128xf32> -> vector<16x128xf32>
    %c0_29 = arith.constant 0 : index
    %c512 = arith.constant 512 : index
    %45 = vector.load %arg9[%c0_29, %c512] : memref<1x640xf32, #tpu.memory_space<vmem>>, vector<1x128xf32>
    %46 = vector.broadcast %45 : vector<1x128xf32> to vector<16x128xf32>
    %47 = arith.addf %44, %46 : vector<16x128xf32>
    %cst_30 = arith.constant dense<0xFF800000> : vector<16xf32>
    %48 = vector.multi_reduction <maximumf>, %47, %cst_30 [1] : vector<16x128xf32> to vector<16xf32>
    %49 = vector.shape_cast %48 : vector<16xf32> to vector<16x1xf32>
    %50 = vector.broadcast %49 : vector<16x1xf32> to vector<16x128xf32>
    %51 = arith.subf %47, %50 : vector<16x128xf32>
    %52 = math.exp %51 : vector<16x128xf32>
    %cst_31 = arith.constant dense<0.000000e+00> : vector<16xf32>
    %53 = vector.multi_reduction <add>, %52, %cst_31 [1] : vector<16x128xf32> to vector<16xf32>
    %54 = vector.shape_cast %53 : vector<16xf32> to vector<16x1xf32>
    %55 = vector.broadcast %54 : vector<16x1xf32> to vector<16x128xf32>
    %56 = arith.divf %52, %55 : vector<16x128xf32>
    %c0_32 = arith.constant 0 : index
    %c0_33 = arith.constant 0 : index
    %57 = vector.load %arg10[%c0_32, %c0_33] : memref<16x128xf32, #tpu.memory_space<vmem>>, vector<16x128xf32>
    tpu.vector_store %arg10[%c0_32, %c0_33], %56 {strides = array<i32>} : memref<16x128xf32, #tpu.memory_space<vmem>>, vector<16x128xf32>,
    return
  }
  func.func @transform_0(%arg0: i32) -> (i32, i32) {
    %c0_i32 = arith.constant 0 : i32
    %c0_i32_0 = arith.constant 0 : i32
    return %arg0, %c0_i32 : i32, i32
  }
  func.func @transform_1(%arg0: i32) -> (i32, i32) {
    %c0_i32 = arith.constant 0 : i32
    %c0_i32_0 = arith.constant 0 : i32
    return %arg0, %c0_i32 : i32, i32
  }
  func.func @transform_2(%arg0: i32) -> (i32, i32) {
    %c0_i32 = arith.constant 0 : i32
    %c0_i32_0 = arith.constant 0 : i32
    return %arg0, %c0_i32 : i32, i32
  }
  func.func @transform_3(%arg0: i32) -> (i32, i32) {
    %c0_i32 = arith.constant 0 : i32
    %c0_i32_0 = arith.constant 0 : i32
    %c0_i32_1 = arith.constant 0 : i32
    return %c0_i32, %c0_i32_0 : i32, i32
  }
  func.func @transform_4(%arg0: i32) -> (i32, i32) {
    %c0_i32 = arith.constant 0 : i32
    %c0_i32_0 = arith.constant 0 : i32
    %c0_i32_1 = arith.constant 0 : i32
    return %c0_i32, %c0_i32_0 : i32, i32
  }
  func.func @transform_5(%arg0: i32) -> (i32, i32) {
    %c0_i32 = arith.constant 0 : i32
    %c0_i32_0 = arith.constant 0 : i32
    %c0_i32_1 = arith.constant 0 : i32
    return %c0_i32, %c0_i32_0 : i32, i32
  }
  func.func @transform_6(%arg0: i32) -> (i32, i32) {
    %c0_i32 = arith.constant 0 : i32
    %c0_i32_0 = arith.constant 0 : i32
    %c0_i32_1 = arith.constant 0 : i32
    return %c0_i32, %c0_i32_0 : i32, i32
  }
  func.func @transform_7(%arg0: i32) -> (i32, i32) {
    %c0_i32 = arith.constant 0 : i32
    %c0_i32_0 = arith.constant 0 : i32
    %c0_i32_1 = arith.constant 0 : i32
    return %c0_i32, %c0_i32_0 : i32, i32
  }
  func.func @transform_8(%arg0: i32) -> (i32, i32) {
    %c0_i32 = arith.constant 0 : i32
    %c0_i32_0 = arith.constant 0 : i32
    %c0_i32_1 = arith.constant 0 : i32
    return %c0_i32, %c0_i32_0 : i32, i32
  }
  func.func @transform_9(%arg0: i32) -> (i32, i32) {
    %c0_i32 = arith.constant 0 : i32
    %c0_i32_0 = arith.constant 0 : i32
    return %arg0, %c0_i32 : i32, i32
  }
  func.func @transform_10(%arg0: i32) -> (i32, i32) {
    %c0_i32 = arith.constant 0 : i32
    %c0_i32_0 = arith.constant 0 : i32
    return %arg0, %c0_i32 : i32, i32
  }
}

</mosaic_0001>

<bundles_post_ra>
// kernel: cvae_forward.1
= control target key start
LH: loop header
LB: loop body
LE: loop exit
PB: predicated region body
PF: predicated region fallthrough
CT: control target
= control target key end

     0   :  { %16 = vsyncpa [#allocation3], 0  ;;  %s1040_s0 = inlined_call_operand.vmem [shape: f32[16,64], index: 0, kind: input, shape index: {}]   ;;  %s1041_s1 = inlined_call_operand.vmem [shape: f32[16,48], index: 1, kind: input, shape index: {}]   ;;  %s1042_s2 = inlined_call_operand.vmem [shape: f32[16,32], index: 2, kind: input, shape index: {}]   ;;  %s1043_s3 = inlined_call_operand.hbm [shape: bf16[64,64], index: 3, kind: input, shape index: {}]   ;;  %s1044_s4 = inlined_call_operand.hbm [shape: bf16[48,64], index: 4, kind: input, shape index: {}]   ;;  %s1045_s5 = inlined_call_operand.vmem [shape: bf16[128,128], index: 5, kind: input, shape index: {}]   ;;  %s1046_s6 = inlined_call_operand.vmem [shape: bf16[32,32], index: 6, kind: input, shape index: {}]   ;;  %s1047_s7 = inlined_call_operand.hbm [shape: bf16[32,128], index: 7, kind: input, shape index: {}]   ;;  %s1048_s8 = inlined_call_operand.hbm [shape: f32[1,640], index: 8, kind: input, shape index: {}]   ;;  %s1049_s9 = inlined_call_operand.vmem [shape: f32[16,128], index: 9, kind: output, shape index: {0}]   ;;  %s1050_s10 = inlined_call_operand.vmem [shape: f32[16,128], index: 10, kind: output, shape index: {1}]  }
   0x1   :  { %17 = vsyncpa [#allocation5], 0 }
   0x2   :  { %18 = vsyncpa [#allocation8], 0  ;;  %s868_s13 = smov [#allocation4]   ;;  %s869_s15 = smov [#allocation2]  }
   0x3   :  { %s42_s14 = sshll.u32 %s868_s13, 4  ;;  %s30_s16 = sshll.u32 %s869_s15, 4  ;;  %s43_s14 = int_to_ptr.vmem [resolvable:$true] %s42_s14  ;;  %s31_s16 = int_to_ptr.vmem [resolvable:$true] %s30_s16 }
   0x4   :  { %s790_s17 = scalar_lea.vmem %s43_s14, 384  ;;  %p795_p1 = scmp.lt.s32.totalorder %s43_s14, %s43_s14 }
   0x5   :  { %p791_p0 = scmp.ne.s32.totalorder %s43_s14, %s790_s17  ;;  %p796_p2 = scmp.lt.s32.totalorder %s790_s17, %s790_s17 }
   0x7   :  { %p797_p3 = por %p796_p2, %p795_p1 }
   0x9   :  { %p798_p4 = pnand %p797_p3, %p791_p0 }
   0xb   :  { %801 = shalt.err (!%p798_p4)
}
   0xc   :  { %s870_s18 = smov 64   ;;  %s871_s19 = smov 4  }
   0xd   :  { %48 = dma.hbm_to_vmem [thread:$0]  %s1044_s4, 384, %s43_s14, [#allocation5], %s870_s18, %s870_s18, %s871_s19  }
   0xe   :  { %s810_s22 = scalar_lea.vmem %s31_s16, 512  ;;  %p815_p6 = scmp.lt.s32.totalorder %s31_s16, %s31_s16 }
   0xf   :  { %p811_p5 = scmp.ne.s32.totalorder %s31_s16, %s810_s22  ;;  %p816_p7 = scmp.lt.s32.totalorder %s810_s22, %s810_s22 }
  0x11   :  { %p817_p8 = por %p816_p7, %p815_p6 }
  0x13   :  { %p818_p9 = pnand %p817_p8, %p811_p5 }
  0x15   :  { %821 = shalt.err (!%p818_p9)
}
  0x16   :  { %36 = dma.hbm_to_vmem [thread:$0]  %s1043_s3, 512, %s31_s16, [#allocation3], %s870_s18, %s870_s18, %s871_s19  }
  0x17   :  { %s872_s25 = smov [#allocation6]   ;;  %s873_s27 = smov [#allocation7]  }
  0x18   :  { %s58_s26 = sshll.u32 %s872_s25, 4  ;;  %s71_s28 = sshll.u32 %s873_s27, 4  ;;  %s59_s26 = int_to_ptr.vmem [resolvable:$true] %s58_s26  ;;  %s72_s28 = int_to_ptr.vmem [resolvable:$true] %s71_s28 }
  0x19   :  { %s830_s29 = scalar_lea.vmem %s59_s26, 256  ;;  %p835_p11 = scmp.lt.s32.totalorder %s59_s26, %s59_s26 }
  0x1a   :  { %p831_p10 = scmp.ne.s32.totalorder %s59_s26, %s830_s29  ;;  %p836_p12 = scmp.lt.s32.totalorder %s830_s29, %s830_s29 }
  0x1c   :  { %p837_p13 = por %p836_p12, %p835_p11 }
  0x1e   :  { %p838_p0 = pnand %p837_p13, %p831_p10 }
  0x20   :  { %841 = shalt.err (!%p838_p0)
}
  0x21   :  { %64 = dma.hbm_to_vmem [thread:$0]  %s1047_s7, 256, %s59_s26, [#allocation5], %s870_s18, %s870_s18, %s871_s19  }
  0x22   :  { %s850_s11 = scalar_lea.vmem %s72_s28, 80  ;;  %s854_s3 = scalar_lea.vmem %s72_s28, 96 }
  0x23   :  { %p851_p1 = scmp.ne.s32.totalorder %s72_s28, %s850_s11  ;;  %p855_p2 = scmp.lt.s32.totalorder %s72_s28, %s72_s28 }
  0x24   :  { %p856_p3 = scmp.lt.s32.totalorder %s854_s3, %s850_s11 }
  0x26   :  { %p857_p4 = por %p856_p3, %p855_p2 }
  0x28   :  { %p858_p5 = pnand %p857_p4, %p851_p1 }
  0x2a   :  { %861 = shalt.err (!%p858_p5)
}
  0x2b   :  { %74 = dma.hbm_to_vmem [thread:$0]  %s1048_s8, 80, %s72_s28, [#allocation8]  }
  0x2c   :  { %862 = dma.done.wait [#allocation3], 512  }
  0x2d   :  { %863 = vsyncadd [#allocation3], 4294966784 }
  0x2e   :  { %864 = dma.done.wait [#allocation5], 640  }
  0x2f   :  { %865 = vsyncadd [#allocation5], 4294966656 }
  0x30   :  { %866 = dma.done.wait [#allocation8], 80  }
  0x31   :  { %867 = vsyncadd [#allocation8], 4294967216  ;;  %v874_v0 = vmov 0.0   ;;  %vm875_vm0 = vmmov 0   ;;  %v739_v1 = vld [vmem:[#allocation2 + $0x18] sm:$0xff]   ;;  %v740_v2 = vld [vmem:[#allocation4 + $0x10] sm:$0xff]  }
  0x32   :  { %668 = vmatprep.subr.bf16.mxu0 %v874_v0  ;;  %680 = vmatprep.subr.bf16.mxu1 %v874_v0  ;;  %v741_v3 = vld [vmem:[#allocation2 + $0x10] sm:$0xff]   ;;  %v742_v4 = vld [vmem:[#allocation4 + $0x8] sm:$0xff]   ;;  %v744_v6 = vld [vmem:[#allocation4] sm:$0xff]   ;;  %vm211_vm1 = vcmask 392192   ;;  %vm130_vm2 = vcmask 523264   ;;  %s876_s17 = smov 96  }
  0x33   :  { %686 = vmatprep.mubr.msk.bf16.mxu1 %vm875_vm0, %v874_v0  ;;  %676 = vmatprep.mubr.msk.bf16.mxu0 %vm875_vm0, %v874_v0  ;;  %v743_v5 = vld [vmem:[#allocation2 + $0x8] sm:$0xff]   ;;  %v177_v7 = vld [vmem:[%s1041_s1] sm:$0xff]  ;;  %v746_v14 = vld [vmem:[%s1045_s5 + $0x38] sm:$0xff]   ;;  %vm467_vm3 = vcmask 261120  }
  0x34   :  { %669 = vmatpush3.bf16.msra.mxu0 %v739_v1  ;;  %681 = vmatpush3.bf16.msra.mxu1 %v740_v2  ;;  %v178_v8 = vld [vmem:[%s1041_s1 + $0x8] sm:$0xff]  ;;  %v745_v9 = vld [vmem:[#allocation2] sm:$0xff]   ;;  %v747_v15 = vld [vmem:[%s1045_s5 + $0x30] sm:$0xff]  }
  0x35   :  { %670 = vmatprep.subr.bf16.mxu0 %v874_v0  ;;  %682 = vmatprep.subr.bf16.mxu1 %v874_v0  ;;  %v88_v10 = vld [vmem:[%s1040_s0] sm:$0xff]  ;;  %v89_v11 = vld [vmem:[%s1040_s0 + $0x8] sm:$0xff]  ;;  %v185_v12 = vpack.c.bf16 %v178_v8, %v177_v7  ;;  %v748_v16 = vld [vmem:[%s1045_s5 + $0x18] sm:$0xff]  }
  0x36   :  { %v98_v13 = vpack.c.bf16 %v89_v11, %v88_v10  ;;  %v749_v17 = vld [vmem:[%s1045_s5 + $0x28] sm:$0xff]   ;;  %v750_v18 = vld [vmem:[%s1045_s5 + $0x10] sm:$0xff]   ;;  %v751_v19 = vld [vmem:[%s1045_s5 + $0x20] sm:$0xff]  }
  0x37   :  { %v752_v20 = vld [vmem:[%s1045_s5 + $0x8] sm:$0xff]   ;;  %v753_v21 = vld [vmem:[%s1045_s5] sm:$0xff]   ;;  %v757_v10 = vld [vmem:[#allocation6] sm:$0xff]  }
  0x38   :  { %671 = vmatpush3.bf16.msra.mxu0 %v741_v3  ;;  %683 = vmatpush3.bf16.msra.mxu1 %v742_v4  ;;  %v619_v22 = vld [vmem:[#allocation7 + $0x1] ss:$0 sm:$0xff]  ;;  %v613_v26 = vld [vmem:[#allocation7] ss:$0 sm:$0xff]  ;;  %v634_v45 = vld [vmem:[#allocation7 + $0x2] ss:$0 sm:$0xff] }
  0x39   :  { %672 = vmatprep.subr.bf16.mxu0 %v874_v0  ;;  %684 = vmatprep.subr.bf16.mxu1 %v874_v0  ;;  %v754_v59 = vld [vmem:[%s1046_s6 + $0x8] sm:$0xff]   ;;  %v755_v60 = vld [vmem:[%s1046_s6] sm:$0xff]  }
  0x3a   :  { %v423_v63 = vld [vmem:[%s1042_s2] sm:$0xff]  ;;  %v424_v2 = vld [vmem:[%s1042_s2 + $0x8] sm:$0xff] }
  0x3b   :  { %v635_v11 = vld [vmem:[#allocation7 + $0x3] ss:$0 sm:$0xff] }
  0x3c   :  { %673 = vmatpush3.bf16.msra.mxu0 %v743_v5  ;;  %685 = vmatpush3.bf16.msra.mxu1 %v744_v6 }
  0x3d   :  { %674 = vmatprep.subr.bf16.mxu0 %v874_v0  ;;  %690 = vmatprep.subr.bf16.mxu1 %v874_v0 }
  0x3f   :  { %687 = vmatmul.mubr.msk.bf16.vlgmr.msra.gmra.mxu1 %vm211_vm1, %v185_v12 }
  0x40   :  { %675 = vmatpush3.bf16.msra.mxu0 %v745_v9  ;;  %698 = vmatprep.mubr.msk.bf16.mxu1 %vm875_vm0, %v874_v0  ;;  %v756_v9 = vld [vmem:[#allocation6 + $0x8] sm:$0xff]  }
  0x41   :  { %702 = vmatprep.subr.bf16.mxu0 %v874_v0  ;;  %691 = vmatpush3.bf16.msra.mxu1 %v746_v14 }
  0x42   :  { %692 = vmatprep.subr.bf16.mxu1 %v874_v0 }
  0x43   :  { %677 = vmatmul.mubr.msk.bf16.vlgmr.msra.gmra.mxu0 %vm130_vm2, %v98_v13 }
  0x44   :  { %710 = vmatprep.mubr.msk.bf16.mxu0 %vm875_vm0, %v874_v0  ;;  %703 = vmatpush3.bf16.msra.mxu0 %v748_v16 }
  0x45   :  { %693 = vmatpush3.bf16.msra.mxu1 %v747_v15  ;;  %704 = vmatprep.subr.bf16.mxu0 %v874_v0 }
  0x46   :  { %694 = vmatprep.subr.bf16.mxu1 %v874_v0 }
  0x48   :  { %705 = vmatpush3.bf16.msra.mxu0 %v750_v18 }
  0x49   :  { %695 = vmatpush3.bf16.msra.mxu1 %v749_v17  ;;  %706 = vmatprep.subr.bf16.mxu0 %v874_v0 }
  0x4a   :  { %696 = vmatprep.subr.bf16.mxu1 %v874_v0 }
  0x4c   :  { %707 = vmatpush3.bf16.msra.mxu0 %v752_v20 }
  0x4d   :  { %697 = vmatpush3.bf16.msra.mxu1 %v751_v19  ;;  %708 = vmatprep.subr.bf16.mxu0 %v874_v0 }
  0x4e   :  { %714 = vmatprep.subr.bf16.mxu1 %v874_v0 }
  0x50   :  { %709 = vmatpush3.bf16.msra.mxu0 %v753_v21  ;;  %v639_v21 = vld [vmem:[#allocation7 + $0x4] ss:$0 sm:$0xff] }
  0x51   :  { %722 = vmatprep.subr.bf16.mxu0 %v874_v0 }
  0xff   :  { %v249_v23 = vpop.f32.mrf.mxu1 }
 0x100   :  { %v250_v24 = vadd.f32 %v619_v22, %v249_v23 }
 0x101   :  { %v688_v25 = vpop.f32.mrf.mxu1 }
 0x102   :  { %758 = vtanh.f32 %v250_v24 }
 0x103   :  { %v168_v27 = vpop.f32.mrf.mxu0  ;;  %v252_v28 = vpop.f32.mrf.mxu1 }
 0x104   :  { %v169_v29 = vadd.f32 %v613_v26, %v168_v27  ;;  %v253_v30 = vadd.f32 %v619_v22, %v252_v28 }
 0x105   :  { %v678_v31 = vpop.f32.mrf.mxu0  ;;  %v689_v32 = vpop.f32.mrf.mxu1 }
 0x106   :  { %760 = vtanh.f32 %v253_v30 }
 0x107   :  { %v171_v33 = vpop.f32.mrf.mxu0  ;;  %762 = vtanh.f32 %v169_v29 }
 0x108   :  { %v172_v34 = vadd.f32 %v613_v26, %v171_v33 }
 0x109   :  { %v679_v35 = vpop.f32.mrf.mxu0 }
 0x10a   :  { %764 = vtanh.f32 %v172_v34 }
 0x10f   :  { %v759_v36 = vpop.eup %758 }
 0x113   :  { %v761_v37 = vpop.eup %760 }
 0x114   :  { %v275_v38 = vpack.c.bf16 %v761_v37, %v759_v36  ;;  %v763_v39 = vpop.eup %762 }
 0x116   :  { %699 = vmatmul.mubr.msk.bf16.vlgmr.msra.gmra.mxu1 %vm130_vm2, %v275_v38 }
 0x117   :  { %v765_v40 = vpop.eup %764  ;;  %718 = vmatprep.mubr.msk.bf16.mxu1 %vm875_vm0, %v874_v0  ;;  %715 = vmatpush3.bf16.msra.mxu1 %v754_v59 }
 0x118   :  { %v266_v41 = vpack.c.bf16 %v765_v40, %v763_v39  ;;  %716 = vmatprep.subr.bf16.mxu1 %v874_v0 }
 0x11a   :  { %711 = vmatmul.mubr.msk.bf16.vlgmr.msra.gmra.mxu0 %vm130_vm2, %v266_v41 }
 0x11b   :  { %726 = vmatprep.mubr.msk.bf16.mxu0 %vm875_vm0, %v874_v0  ;;  %717 = vmatpush3.bf16.msra.mxu1 %v755_v60 }
 0x11c   :  { %723 = vmatpush3.bf16.msra.mxu0 %v756_v9 }
 0x11d   :  { %724 = vmatprep.subr.bf16.mxu0 %v874_v0 }
 0x120   :  { %725 = vmatpush3.bf16.msra.mxu0 %v757_v10 }
 0x1d6   :  { %v337_v42 = vpop.f32.mrf.mxu1 }
 0x1d8   :  { %v700_v43 = vpop.f32.mrf.mxu1 }
 0x1da   :  { %v405_v44 = vpop.f32.mrf.mxu0  ;;  %v340_v46 = vpop.f32.mrf.mxu1 }
 0x1db   :  { %v406_v47 = vadd.f32 %v405_v44, %v337_v42 }
 0x1dc   :  { %v712_v48 = vpop.f32.mrf.mxu0  ;;  %v701_v50 = vpop.f32.mrf.mxu1 }
 0x1dd   :  { %v419_v49 = vadd.f32 %v634_v45, %v406_v47 }
 0x1de   :  { %v408_v51 = vpop.f32.mrf.mxu0 }
 0x1df   :  { %421 = vst [vmem:[%s1050_s10] sm:$0xff] %v419_v49  ;;  %v425_v52 = vmul.f32 0.5, %v419_v49  ;;  %v409_v53 = vadd.f32 %v408_v51, %v340_v46 }
 0x1e0   :  { %v713_v54 = vpop.f32.mrf.mxu0 }
 0x1e1   :  { %v427_v55 = vmul.f32 1.442695, %v425_v52  ;;  %v420_v56 = vadd.f32 %v634_v45, %v409_v53 }
 0x1e3   :  { %766 = vpow2.f32 %v427_v55  ;;  %422 = vst [vmem:[%s1050_s10 + $0x8] sm:$0xff] %v420_v56  ;;  %v426_v57 = vmul.f32 0.5, %v420_v56 }
 0x1e5   :  { %v429_v58 = vmul.f32 1.442695, %v426_v57 }
 0x1e7   :  { %768 = vpow2.f32 %v429_v58 }
 0x1f0   :  { %v767_v61 = vpop.eup %766 }
 0x1f1   :  { %433 = vrot.lane.b32.xlu0 %v767_v61, %s876_s17 }
 0x1f4   :  { %v769_v62 = vpop.eup %768 }
 0x1f5   :  { %435 = vrot.lane.b32.xlu0 %v769_v62, %s876_s17 }
 0x263   :  { %v434_v1 = vpop.permute.xlu0 %433 }
 0x264   :  { %v439_v3 = vmul.f32 %v434_v1, %v423_v63 }
 0x266   :  { %v441_v6 = vadd.f32 %v439_v3, %v419_v49 }
 0x267   :  { %v436_v4 = vpop.permute.xlu0 %435 }
 0x268   :  { %v440_v5 = vmul.f32 %v436_v4, %v424_v2 }
 0x26a   :  { %v442_v7 = vadd.f32 %v440_v5, %v420_v56 }
 0x26c   :  { %v447_v8 = vpack.c.bf16 %v442_v7, %v441_v6 }
 0x26e   :  { %719 = vmatmul.mubr.msk.bf16.vlgmr.msra.gmra.mxu1 %vm467_vm3, %v447_v8 }
 0x32e   :  { %v505_v12 = vpop.f32.mrf.mxu1 }
 0x32f   :  { %v506_v13 = vadd.f32 %v635_v11, %v505_v12 }
 0x330   :  { %v720_v14 = vpop.f32.mrf.mxu1 }
 0x331   :  { %770 = vtanh.f32 %v506_v13 }
 0x332   :  { %v508_v15 = vpop.f32.mrf.mxu1 }
 0x333   :  { %v509_v16 = vadd.f32 %v635_v11, %v508_v15 }
 0x334   :  { %v721_v17 = vpop.f32.mrf.mxu1 }
 0x335   :  { %772 = vtanh.f32 %v509_v16 }
 0x33e   :  { %v771_v18 = vpop.eup %770 }
 0x342   :  { %v773_v19 = vpop.eup %772 }
 0x343   :  { %v518_v20 = vpack.c.bf16 %v773_v19, %v771_v18 }
 0x345   :  { %727 = vmatmul.mubr.msk.bf16.vlgmr.msra.gmra.mxu0 %vm467_vm3, %v518_v20 }
 0x405   :  { %v575_v22 = vpop.f32.mrf.mxu0 }
 0x406   :  { %v576_v23 = vadd.f32 %v639_v21, %v575_v22 }
 0x407   :  { %v728_v24 = vpop.f32.mrf.mxu0 }
 0x408   :  { %582 = vmax.xlane.f32.xlu1 %v576_v23 }
 0x409   :  { %v578_v0 = vpop.f32.mrf.mxu0 }
 0x40a   :  { %v579_v25 = vadd.f32 %v639_v21, %v578_v0 }
 0x40b   :  { %v729_v26 = vpop.f32.mrf.mxu0 }
 0x40c   :  { %584 = vmax.xlane.f32.xlu1 %v579_v25 }
 0x491   :  { %v583_v27 = vpop.xlane.xlu1 %582 }
 0x492   :  { %v586_v28 = vsub.f32 %v576_v23, %v583_v27 }
 0x494   :  { %v588_v29 = vmul.f32 1.442695, %v586_v28 }
 0x495   :  { %v585_v30 = vpop.xlane.xlu1 %584 }
 0x496   :  { %774 = vpow2.f32 %v588_v29  ;;  %v587_v31 = vsub.f32 %v579_v25, %v585_v30 }
 0x498   :  { %v590_v32 = vmul.f32 1.442695, %v587_v31 }
 0x49a   :  { %776 = vpow2.f32 %v590_v32 }
 0x4a3   :  { %v775_v33 = vpop.eup %774 }
 0x4a4   :  { %592 = vadd.xlane.f32.xlu0 %v775_v33 }
 0x4a7   :  { %v777_v34 = vpop.eup %776 }
 0x4a8   :  { %594 = vadd.xlane.f32.xlu1 %v777_v34 }
 0x52d   :  { %v593_v35 = vpop.xlane.xlu0 %592 }
 0x52e   :  { %778 = vrcp.f32 %v593_v35 }
 0x531   :  { %v595_v36 = vpop.xlane.xlu1 %594 }
 0x532   :  { %780 = vrcp.f32 %v595_v36 }
 0x53b   :  { %v779_v37 = vpop.eup %778 }
 0x53c   :  { %v597_v38 = vmul.f32 %v779_v37, %v775_v33 }
 0x53e   :  { %600 = vst [vmem:[%s1049_s9] sm:$0xff] %v597_v38 }
 0x53f   :  { %v781_v39 = vpop.eup %780 }
 0x540   :  { %v599_v40 = vmul.f32 %v781_v39, %v777_v34 }
 0x542   :  { %601 = vst [vmem:[%s1049_s9 + $0x8] sm:$0xff] %v599_v40 }
 0x543   :  { %610 = vsyncpa [#allocation3], 1 }
 0x544   :  { %611 = vsyncpa [#allocation5], 1 }
 0x545   :  { %612 = vsyncpa [#allocation8], 1 }

// kernel: cvae_forward.1
= control target key start
LH: loop header
LB: loop body
LE: loop exit
PB: predicated region body
PF: predicated region fallthrough
CT: control target
= control target key end

     0   :  { %16 = vsyncpa [#allocation3], 0  ;;  %s1040_s0 = inlined_call_operand.vmem [shape: f32[16,64], index: 0, kind: input, shape index: {}]   ;;  %s1041_s1 = inlined_call_operand.vmem [shape: f32[16,48], index: 1, kind: input, shape index: {}]   ;;  %s1042_s2 = inlined_call_operand.vmem [shape: f32[16,32], index: 2, kind: input, shape index: {}]   ;;  %s1043_s3 = inlined_call_operand.hbm [shape: bf16[64,64], index: 3, kind: input, shape index: {}]   ;;  %s1044_s4 = inlined_call_operand.hbm [shape: bf16[48,64], index: 4, kind: input, shape index: {}]   ;;  %s1045_s5 = inlined_call_operand.vmem [shape: bf16[128,128], index: 5, kind: input, shape index: {}]   ;;  %s1046_s6 = inlined_call_operand.vmem [shape: bf16[32,32], index: 6, kind: input, shape index: {}]   ;;  %s1047_s7 = inlined_call_operand.hbm [shape: bf16[32,128], index: 7, kind: input, shape index: {}]   ;;  %s1048_s8 = inlined_call_operand.hbm [shape: f32[1,640], index: 8, kind: input, shape index: {}]   ;;  %s1049_s9 = inlined_call_operand.vmem [shape: f32[16,128], index: 9, kind: output, shape index: {0}]   ;;  %s1050_s10 = inlined_call_operand.vmem [shape: f32[16,128], index: 10, kind: output, shape index: {1}]  }
   0x1   :  { %17 = vsyncpa [#allocation5], 0 }
   0x2   :  { %18 = vsyncpa [#allocation8], 0  ;;  %s868_s13 = smov [#allocation4]   ;;  %s869_s15 = smov [#allocation2]  }
   0x3   :  { %s42_s14 = sshll.u32 %s868_s13, 4  ;;  %s30_s16 = sshll.u32 %s869_s15, 4  ;;  %s43_s14 = int_to_ptr.vmem [resolvable:$true] %s42_s14  ;;  %s31_s16 = int_to_ptr.vmem [resolvable:$true] %s30_s16 }
   0x4   :  { %s790_s17 = scalar_lea.vmem %s43_s14, 384  ;;  %p795_p1 = scmp.lt.s32.totalorder %s43_s14, %s43_s14 }
   0x5   :  { %p791_p0 = scmp.ne.s32.totalorder %s43_s14, %s790_s17  ;;  %p796_p2 = scmp.lt.s32.totalorder %s790_s17, %s790_s17 }
   0x7   :  { %p797_p3 = por %p796_p2, %p795_p1 }
   0x9   :  { %p798_p4 = pnand %p797_p3, %p791_p0 }
   0xb   :  { %801 = shalt.err (!%p798_p4)
}
   0xc   :  { %s870_s18 = smov 64   ;;  %s871_s19 = smov 4  }
   0xd   :  { %48 = dma.hbm_to_vmem [thread:$0]  %s1044_s4, 384, %s43_s14, [#allocation5], %s870_s18, %s870_s18, %s871_s19  }
   0xe   :  { %s810_s22 = scalar_lea.vmem %s31_s16, 512  ;;  %p815_p6 = scmp.lt.s32.totalorder %s31_s16, %s31_s16 }
   0xf   :  { %p811_p5 = scmp.ne.s32.totalorder %s31_s16, %s810_s22  ;;  %p816_p7 = scmp.lt.s32.totalorder %s810_s22, %s810_s22 }
  0x11   :  { %p817_p8 = por %p816_p7, %p815_p6 }
  0x13   :  { %p818_p9 = pnand %p817_p8, %p811_p5 }
  0x15   :  { %821 = shalt.err (!%p818_p9)
}
  0x16   :  { %36 = dma.hbm_to_vmem [thread:$0]  %s1043_s3, 512, %s31_s16, [#allocation3], %s870_s18, %s870_s18, %s871_s19  }
  0x17   :  { %s872_s25 = smov [#allocation6]   ;;  %s873_s27 = smov [#allocation7]  }
  0x18   :  { %s58_s26 = sshll.u32 %s872_s25, 4  ;;  %s71_s28 = sshll.u32 %s873_s27, 4  ;;  %s59_s26 = int_to_ptr.vmem [resolvable:$true] %s58_s26  ;;  %s72_s28 = int_to_ptr.vmem [resolvable:$true] %s71_s28 }
  0x19   :  { %s830_s29 = scalar_lea.vmem %s59_s26, 256  ;;  %p835_p11 = scmp.lt.s32.totalorder %s59_s26, %s59_s26 }
  0x1a   :  { %p831_p10 = scmp.ne.s32.totalorder %s59_s26, %s830_s29  ;;  %p836_p12 = scmp.lt.s32.totalorder %s830_s29, %s830_s29 }
  0x1c   :  { %p837_p13 = por %p836_p12, %p835_p11 }
  0x1e   :  { %p838_p0 = pnand %p837_p13, %p831_p10 }
  0x20   :  { %841 = shalt.err (!%p838_p0)
}
  0x21   :  { %64 = dma.hbm_to_vmem [thread:$0]  %s1047_s7, 256, %s59_s26, [#allocation5], %s870_s18, %s870_s18, %s871_s19  }
  0x22   :  { %s850_s11 = scalar_lea.vmem %s72_s28, 80  ;;  %s854_s3 = scalar_lea.vmem %s72_s28, 96 }
  0x23   :  { %p851_p1 = scmp.ne.s32.totalorder %s72_s28, %s850_s11  ;;  %p855_p2 = scmp.lt.s32.totalorder %s72_s28, %s72_s28 }
  0x24   :  { %p856_p3 = scmp.lt.s32.totalorder %s854_s3, %s850_s11 }
  0x26   :  { %p857_p4 = por %p856_p3, %p855_p2 }
  0x28   :  { %p858_p5 = pnand %p857_p4, %p851_p1 }
  0x2a   :  { %861 = shalt.err (!%p858_p5)
}
  0x2b   :  { %74 = dma.hbm_to_vmem [thread:$0]  %s1048_s8, 80, %s72_s28, [#allocation8]  }
  0x2c   :  { %862 = dma.done.wait [#allocation3], 512  }
  0x2d   :  { %863 = vsyncadd [#allocation3], 4294966784 }
  0x2e   :  { %864 = dma.done.wait [#allocation5], 640  }
  0x2f   :  { %865 = vsyncadd [#allocation5], 4294966656 }
  0x30   :  { %866 = dma.done.wait [#allocation8], 80  }
  0x31   :  { %867 = vsyncadd [#allocation8], 4294967216  ;;  %v874_v0 = vmov 0.0   ;;  %vm875_vm0 = vmmov 0   ;;  %v739_v1 = vld [vmem:[#allocation2 + $0x18] sm:$0xff]   ;;  %v740_v2 = vld [vmem:[#allocation4 + $0x10] sm:$0xff]  }
  0x32   :  { %668 = vmatprep.subr.bf16.mxu0 %v874_v0  ;;  %680 = vmatprep.subr.bf16.mxu1 %v874_v0  ;;  %v741_v3 = vld [vmem:[#allocation2 + $0x10] sm:$0xff]   ;;  %v742_v4 = vld [vmem:[#allocation4 + $0x8] sm:$0xff]   ;;  %v744_v6 = vld [vmem:[#allocation4] sm:$0xff]   ;;  %vm211_vm1 = vcmask 392192   ;;  %vm130_vm2 = vcmask 523264   ;;  %s876_s17 = smov 96  }
  0x33   :  { %686 = vmatprep.mubr.msk.bf16.mxu1 %vm875_vm0, %v874_v0  ;;  %676 = vmatprep.mubr.msk.bf16.mxu0 %vm875_vm0, %v874_v0  ;;  %v743_v5 = vld [vmem:[#allocation2 + $0x8] sm:$0xff]   ;;  %v177_v7 = vld [vmem:[%s1041_s1] sm:$0xff]  ;;  %v746_v14 = vld [vmem:[%s1045_s5 + $0x38] sm:$0xff]   ;;  %vm467_vm3 = vcmask 261120  }
  0x34   :  { %669 = vmatpush3.bf16.msra.mxu0 %v739_v1  ;;  %681 = vmatpush3.bf16.msra.mxu1 %v740_v2  ;;  %v178_v8 = vld [vmem:[%s1041_s1 + $0x8] sm:$0xff]  ;;  %v745_v9 = vld [vmem:[#allocation2] sm:$0xff]   ;;  %v747_v15 = vld [vmem:[%s1045_s5 + $0x30] sm:$0xff]  }
  0x35   :  { %670 = vmatprep.subr.bf16.mxu0 %v874_v0  ;;  %682 = vmatprep.subr.bf16.mxu1 %v874_v0  ;;  %v88_v10 = vld [vmem:[%s1040_s0] sm:$0xff]  ;;  %v89_v11 = vld [vmem:[%s1040_s0 + $0x8] sm:$0xff]  ;;  %v185_v12 = vpack.c.bf16 %v178_v8, %v177_v7  ;;  %v748_v16 = vld [vmem:[%s1045_s5 + $0x18] sm:$0xff]  }
  0x36   :  { %v98_v13 = vpack.c.bf16 %v89_v11, %v88_v10  ;;  %v749_v17 = vld [vmem:[%s1045_s5 + $0x28] sm:$0xff]   ;;  %v750_v18 = vld [vmem:[%s1045_s5 + $0x10] sm:$0xff]   ;;  %v751_v19 = vld [vmem:[%s1045_s5 + $0x20] sm:$0xff]  }
  0x37   :  { %v752_v20 = vld [vmem:[%s1045_s5 + $0x8] sm:$0xff]   ;;  %v753_v21 = vld [vmem:[%s1045_s5] sm:$0xff]   ;;  %v757_v10 = vld [vmem:[#allocation6] sm:$0xff]  }
  0x38   :  { %671 = vmatpush3.bf16.msra.mxu0 %v741_v3  ;;  %683 = vmatpush3.bf16.msra.mxu1 %v742_v4  ;;  %v619_v22 = vld [vmem:[#allocation7 + $0x1] ss:$0 sm:$0xff]  ;;  %v613_v26 = vld [vmem:[#allocation7] ss:$0 sm:$0xff]  ;;  %v634_v45 = vld [vmem:[#allocation7 + $0x2] ss:$0 sm:$0xff] }
  0x39   :  { %672 = vmatprep.subr.bf16.mxu0 %v874_v0  ;;  %684 = vmatprep.subr.bf16.mxu1 %v874_v0  ;;  %v754_v59 = vld [vmem:[%s1046_s6 + $0x8] sm:$0xff]   ;;  %v755_v60 = vld [vmem:[%s1046_s6] sm:$0xff]  }
  0x3a   :  { %v423_v63 = vld [vmem:[%s1042_s2] sm:$0xff]  ;;  %v424_v2 = vld [vmem:[%s1042_s2 + $0x8] sm:$0xff] }
  0x3b   :  { %v635_v11 = vld [vmem:[#allocation7 + $0x3] ss:$0 sm:$0xff] }
  0x3c   :  { %673 = vmatpush3.bf16.msra.mxu0 %v743_v5  ;;  %685 = vmatpush3.bf16.msra.mxu1 %v744_v6 }
  0x3d   :  { %674 = vmatprep.subr.bf16.mxu0 %v874_v0  ;;  %690 = vmatprep.subr.bf16.mxu1 %v874_v0 }
  0x3f   :  { %687 = vmatmul.mubr.msk.bf16.vlgmr.msra.gmra.mxu1 %vm211_vm1, %v185_v12 }
  0x40   :  { %675 = vmatpush3.bf16.msra.mxu0 %v745_v9  ;;  %698 = vmatprep.mubr.msk.bf16.mxu1 %vm875_vm0, %v874_v0  ;;  %v756_v9 = vld [vmem:[#allocation6 + $0x8] sm:$0xff]  }
  0x41   :  { %702 = vmatprep.subr.bf16.mxu0 %v874_v0  ;;  %691 = vmatpush3.bf16.msra.mxu1 %v746_v14 }
  0x42   :  { %692 = vmatprep.subr.bf16.mxu1 %v874_v0 }
  0x43   :  { %677 = vmatmul.mubr.msk.bf16.vlgmr.msra.gmra.mxu0 %vm130_vm2, %v98_v13 }
  0x44   :  { %710 = vmatprep.mubr.msk.bf16.mxu0 %vm875_vm0, %v874_v0  ;;  %703 = vmatpush3.bf16.msra.mxu0 %v748_v16 }
  0x45   :  { %693 = vmatpush3.bf16.msra.mxu1 %v747_v15  ;;  %704 = vmatprep.subr.bf16.mxu0 %v874_v0 }
  0x46   :  { %694 = vmatprep.subr.bf16.mxu1 %v874_v0 }
  0x48   :  { %705 = vmatpush3.bf16.msra.mxu0 %v750_v18 }
  0x49   :  { %695 = vmatpush3.bf16.msra.mxu1 %v749_v17  ;;  %706 = vmatprep.subr.bf16.mxu0 %v874_v0 }
  0x4a   :  { %696 = vmatprep.subr.bf16.mxu1 %v874_v0 }
  0x4c   :  { %707 = vmatpush3.bf16.msra.mxu0 %v752_v20 }
  0x4d   :  { %697 = vmatpush3.bf16.msra.mxu1 %v751_v19  ;;  %708 = vmatprep.subr.bf16.mxu0 %v874_v0 }
  0x4e   :  { %714 = vmatprep.subr.bf16.mxu1 %v874_v0 }
  0x50   :  { %709 = vmatpush3.bf16.msra.mxu0 %v753_v21  ;;  %v639_v21 = vld [vmem:[#allocation7 + $0x4] ss:$0 sm:$0xff] }
  0x51   :  { %722 = vmatprep.subr.bf16.mxu0 %v874_v0 }
  0xff   :  { %v249_v23 = vpop.f32.mrf.mxu1 }
 0x100   :  { %v250_v24 = vadd.f32 %v619_v22, %v249_v23 }
 0x101   :  { %v688_v25 = vpop.f32.mrf.mxu1 }
 0x102   :  { %758 = vtanh.f32 %v250_v24 }
 0x103   :  { %v168_v27 = vpop.f32.mrf.mxu0  ;;  %v252_v28 = vpop.f32.mrf.mxu1 }
 0x104   :  { %v169_v29 = vadd.f32 %v613_v26, %v168_v27  ;;  %v253_v30 = vadd.f32 %v619_v22, %v252_v28 }
 0x105   :  { %v678_v31 = vpop.f32.mrf.mxu0  ;;  %v689_v32 = vpop.f32.mrf.mxu1 }
 0x106   :  { %760 = vtanh.f32 %v253_v30 }
 0x107   :  { %v171_v33 = vpop.f32.mrf.mxu0  ;;  %762 = vtanh.f32 %v169_v29 }
 0x108   :  { %v172_v34 = vadd.f32 %v613_v26, %v171_v33 }
 0x109   :  { %v679_v35 = vpop.f32.mrf.mxu0 }
 0x10a   :  { %764 = vtanh.f32 %v172_v34 }
 0x10f   :  { %v759_v36 = vpop.eup %758 }
 0x113   :  { %v761_v37 = vpop.eup %760 }
 0x114   :  { %v275_v38 = vpack.c.bf16 %v761_v37, %v759_v36  ;;  %v763_v39 = vpop.eup %762 }
 0x116   :  { %699 = vmatmul.mubr.msk.bf16.vlgmr.msra.gmra.mxu1 %vm130_vm2, %v275_v38 }
 0x117   :  { %v765_v40 = vpop.eup %764  ;;  %718 = vmatprep.mubr.msk.bf16.mxu1 %vm875_vm0, %v874_v0  ;;  %715 = vmatpush3.bf16.msra.mxu1 %v754_v59 }
 0x118   :  { %v266_v41 = vpack.c.bf16 %v765_v40, %v763_v39  ;;  %716 = vmatprep.subr.bf16.mxu1 %v874_v0 }
 0x11a   :  { %711 = vmatmul.mubr.msk.bf16.vlgmr.msra.gmra.mxu0 %vm130_vm2, %v266_v41 }
 0x11b   :  { %726 = vmatprep.mubr.msk.bf16.mxu0 %vm875_vm0, %v874_v0  ;;  %717 = vmatpush3.bf16.msra.mxu1 %v755_v60 }
 0x11c   :  { %723 = vmatpush3.bf16.msra.mxu0 %v756_v9 }
 0x11d   :  { %724 = vmatprep.subr.bf16.mxu0 %v874_v0 }
 0x120   :  { %725 = vmatpush3.bf16.msra.mxu0 %v757_v10 }
 0x1d6   :  { %v337_v42 = vpop.f32.mrf.mxu1 }
 0x1d8   :  { %v700_v43 = vpop.f32.mrf.mxu1 }
 0x1da   :  { %v405_v44 = vpop.f32.mrf.mxu0  ;;  %v340_v46 = vpop.f32.mrf.mxu1 }
 0x1db   :  { %v406_v47 = vadd.f32 %v405_v44, %v337_v42 }
 0x1dc   :  { %v712_v48 = vpop.f32.mrf.mxu0  ;;  %v701_v50 = vpop.f32.mrf.mxu1 }
 0x1dd   :  { %v419_v49 = vadd.f32 %v634_v45, %v406_v47 }
 0x1de   :  { %v408_v51 = vpop.f32.mrf.mxu0 }
 0x1df   :  { %421 = vst [vmem:[%s1050_s10] sm:$0xff] %v419_v49  ;;  %v425_v52 = vmul.f32 0.5, %v419_v49  ;;  %v409_v53 = vadd.f32 %v408_v51, %v340_v46 }
 0x1e0   :  { %v713_v54 = vpop.f32.mrf.mxu0 }
 0x1e1   :  { %v427_v55 = vmul.f32 1.442695, %v425_v52  ;;  %v420_v56 = vadd.f32 %v634_v45, %v409_v53 }
 0x1e3   :  { %766 = vpow2.f32 %v427_v55  ;;  %422 = vst [vmem:[%s1050_s10 + $0x8] sm:$0xff] %v420_v56  ;;  %v426_v57 = vmul.f32 0.5, %v420_v56 }
 0x1e5   :  { %v429_v58 = vmul.f32 1.442695, %v426_v57 }
 0x1e7   :  { %768 = vpow2.f32 %v429_v58 }
 0x1f0   :  { %v767_v61 = vpop.eup %766 }
 0x1f1   :  { %433 = vrot.lane.b32.xlu0 %v767_v61, %s876_s17 }
 0x1f4   :  { %v769_v62 = vpop.eup %768 }
 0x1f5   :  { %435 = vrot.lane.b32.xlu0 %v769_v62, %s876_s17 }
 0x263   :  { %v434_v1 = vpop.permute.xlu0 %433 }
 0x264   :  { %v439_v3 = vmul.f32 %v434_v1, %v423_v63 }
 0x266   :  { %v441_v6 = vadd.f32 %v439_v3, %v419_v49 }
 0x267   :  { %v436_v4 = vpop.permute.xlu0 %435 }
 0x268   :  { %v440_v5 = vmul.f32 %v436_v4, %v424_v2 }
 0x26a   :  { %v442_v7 = vadd.f32 %v440_v5, %v420_v56 }
 0x26c   :  { %v447_v8 = vpack.c.bf16 %v442_v7, %v441_v6 }
 0x26e   :  { %719 = vmatmul.mubr.msk.bf16.vlgmr.msra.gmra.mxu1 %vm467_vm3, %v447_v8 }
 0x32e   :  { %v505_v12 = vpop.f32.mrf.mxu1 }
 0x32f   :  { %v506_v13 = vadd.f32 %v635_v11, %v505_v12 }
 0x330   :  { %v720_v14 = vpop.f32.mrf.mxu1 }
 0x331   :  { %770 = vtanh.f32 %v506_v13 }
 0x332   :  { %v508_v15 = vpop.f32.mrf.mxu1 }
 0x333   :  { %v509_v16 = vadd.f32 %v635_v11, %v508_v15 }
 0x334   :  { %v721_v17 = vpop.f32.mrf.mxu1 }
 0x335   :  { %772 = vtanh.f32 %v509_v16 }
 0x33e   :  { %v771_v18 = vpop.eup %770 }
 0x342   :  { %v773_v19 = vpop.eup %772 }
 0x343   :  { %v518_v20 = vpack.c.bf16 %v773_v19, %v771_v18 }
 0x345   :  { %727 = vmatmul.mubr.msk.bf16.vlgmr.msra.gmra.mxu0 %vm467_vm3, %v518_v20 }
 0x405   :  { %v575_v22 = vpop.f32.mrf.mxu0 }
 0x406   :  { %v576_v23 = vadd.f32 %v639_v21, %v575_v22 }
 0x407   :  { %v728_v24 = vpop.f32.mrf.mxu0 }
 0x408   :  { %582 = vmax.xlane.f32.xlu1 %v576_v23 }
 0x409   :  { %v578_v0 = vpop.f32.mrf.mxu0 }
 0x40a   :  { %v579_v25 = vadd.f32 %v639_v21, %v578_v0 }
 0x40b   :  { %v729_v26 = vpop.f32.mrf.mxu0 }
 0x40c   :  { %584 = vmax.xlane.f32.xlu1 %v579_v25 }
 0x491   :  { %v583_v27 = vpop.xlane.xlu1 %582 }
 0x492   :  { %v586_v28 = vsub.f32 %v576_v23, %v583_v27 }
 0x494   :  { %v588_v29 = vmul.f32 1.442695, %v586_v28 }
 0x495   :  { %v585_v30 = vpop.xlane.xlu1 %584 }
 0x496   :  { %774 = vpow2.f32 %v588_v29  ;;  %v587_v31 = vsub.f32 %v579_v25, %v585_v30 }
 0x498   :  { %v590_v32 = vmul.f32 1.442695, %v587_v31 }
 0x49a   :  { %776 = vpow2.f32 %v590_v32 }
 0x4a3   :  { %v775_v33 = vpop.eup %774 }
 0x4a4   :  { %592 = vadd.xlane.f32.xlu0 %v775_v33 }
 0x4a7   :  { %v777_v34 = vpop.eup %776 }
 0x4a8   :  { %594 = vadd.xlane.f32.xlu1 %v777_v34 }
 0x52d   :  { %v593_v35 = vpop.xlane.xlu0 %592 }
 0x52e   :  { %778 = vrcp.f32 %v593_v35 }
 0x531   :  { %v595_v36 = vpop.xlane.xlu1 %594 }
 0x532   :  { %780 = vrcp.f32 %v595_v36 }
 0x53b   :  { %v779_v37 = vpop.eup %778 }
 0x53c   :  { %v597_v38 = vmul.f32 %v779_v37, %v775_v33 }
 0x53e   :  { %600 = vst [vmem:[%s1049_s9] sm:$0xff] %v597_v38 }
 0x53f   :  { %v781_v39 = vpop.eup %780 }
 0x540   :  { %v599_v40 = vmul.f32 %v781_v39, %v777_v34 }
 0x542   :  { %601 = vst [vmem:[%s1049_s9 + $0x8] sm:$0xff] %v599_v40 }
 0x543   :  { %610 = vsyncpa [#allocation3], 1 }
 0x544   :  { %611 = vsyncpa [#allocation5], 1 }
 0x545   :  { %612 = vsyncpa [#allocation8], 1 }

</bundles_post_ra>
